<compile_context>
chip_gen: v6e
topology: v6e:2x2x1
jax: 0.10.0
libtpu: 0.0.40
codegen_flags: <defaults>
</compile_context>

<pallas_src>
import functools

import jax
import jax.numpy as jnp
import numpy as np
from jax import lax
from jax.experimental import pallas as pl
from jax.experimental.pallas import tpu as pltpu


def _aspp_kernel(x_ref, w_ref, shift_ref, o_ref, *, KH, KW, dilation, Wp, n_cols):
    """One batch element per grid step (channel-first, spatial-on-lanes).

    x_ref:     (1, Cin, L)        bf16 zero-padded image, spatial flattened.
                                  L = (Hp+1)*Wp (one zero guard row at the end
                                  so every tap slice stays in bounds).
    w_ref:     (Cout, KH*KW*Cin)  bf16 conv weights with BN scale folded in,
                                  tap-major (kh, kw, cin) column order.
    shift_ref: (Cout, 1)          f32 folded BN shift.
    o_ref:     (1, Cout, n_cols)  n_cols = Ho*Wp: Wp-wide output rows (the
                                  j >= Wo columns are garbage, cropped by the
                                  wrapper) so every tap is a constant lane
                                  offset of the flat image.
    """
    x = x_ref[0]                                   # (Cin, L) bf16, single load

    # im2col built once: each dilated tap is a static lane-offset slice.
    taps = []
    for kh in range(KH):
        for kw in range(KW):
            off = kh * dilation * Wp + kw * dilation
            taps.append(x[:, off:off + n_cols])    # (Cin, n_cols) bf16
    patch = jnp.concatenate(taps, axis=0)          # (KH*KW*Cin, n_cols) bf16

    # Single deep-K MXU matmul, f32 accumulation.
    acc = jnp.dot(w_ref[...], patch,
                  preferred_element_type=jnp.float32)   # (Cout, n_cols) f32

    # Fused BN shift (scale already folded into weights) + ReLU, f32 epilogue.
    o_ref[0] = jnp.maximum(acc + shift_ref[...], 0.0).astype(o_ref.dtype)


def aspp_module_forward(x_nchw, weight_oihw, bn_gamma, bn_beta, bn_mean, bn_var,
                        *, padding, dilation, eps=1e-5):
    """Forward of _ASPPModule: Conv2d(stride=1, no bias) -> BN(eval) -> ReLU.

    Input and output are NCHW (PyTorch layout)."""
    N, Cin, H, W = x_nchw.shape
    Cout, Cin_w, KH, KW = weight_oihw.shape
    assert Cin == Cin_w
    Hp, Wp = H + 2 * padding, W + 2 * padding
    Ho, Wo = Hp - dilation * (KH - 1), Wp - dilation * (KW - 1)
    assert Ho > 0 and Wo > 0

    # Zero-pad spatially (+1 guard row at the bottom so the flattened-row trick
    # never reads out of bounds), flatten H*W onto the lane axis, cast to bf16.
    x_pad = jnp.pad(x_nchw, ((0, 0), (0, 0),
                             (padding, padding + 1), (padding, padding)))
    L = (Hp + 1) * Wp
    x_flat = x_pad.reshape(N, Cin, L).astype(jnp.bfloat16)

    # Inference BN folded to per-channel scale/shift; scale goes into weights.
    scale = bn_gamma / jnp.sqrt(bn_var + eps)                        # (Cout,)
    shift = (bn_beta - bn_mean * scale).reshape(Cout, 1).astype(jnp.float32)
    # (Cout, Cin, KH, KW) -> (Cout, KH*KW*Cin), tap-major to match the kernel's
    # im2col concatenation order, then fold the BN scale and cast to bf16.
    w2 = jnp.transpose(weight_oihw, (0, 2, 3, 1)).reshape(Cout, KH * KW * Cin)
    w2 = (w2 * scale[:, None]).astype(jnp.bfloat16)

    # Kernel computes Wp-wide output rows (flat column index = i*Wp + j) so all
    # taps are constant lane offsets; the j in [Wo, Wp) columns are cropped.
    n_cols = Ho * Wp

    kernel = functools.partial(_aspp_kernel, KH=KH, KW=KW, dilation=dilation,
                               Wp=Wp, n_cols=n_cols)

    out_flat = pl.pallas_call(
        kernel,
        out_shape=jax.ShapeDtypeStruct((N, Cout, n_cols), x_nchw.dtype),
        grid_spec=pltpu.PrefetchScalarGridSpec(
            num_scalar_prefetch=0,
            grid=(N,),
            in_specs=[
                pl.BlockSpec((1, Cin, L), lambda n: (n, 0, 0)),
                pl.BlockSpec((Cout, KH * KW * Cin), lambda n: (0, 0)),
                pl.BlockSpec((Cout, 1), lambda n: (0, 0)),
            ],
            out_specs=pl.BlockSpec((1, Cout, n_cols), lambda n: (n, 0, 0)),
        ),
        compiler_params=pltpu.CompilerParams(
            dimension_semantics=("parallel",),
            vmem_limit_bytes=32 * 1024 * 1024,
        ),
    )(x_flat, w2, shift)

    # Free metadata reshape + tiny column crop; result is already NCHW.
    return out_flat.reshape(N, Cout, Ho, Wp)[:, :, :, :Wo]


def _reference(x_nchw, weight_oihw, bn_gamma, bn_beta, bn_mean, bn_var,
               *, padding, dilation, eps=1e-5):
    """Pure-JAX reference: conv_general_dilated + BN(eval) + ReLU (f32)."""
    y = lax.conv_general_dilated(
        x_nchw, weight_oihw,
        window_strides=(1, 1),
        padding=((padding, padding), (padding, padding)),
        rhs_dilation=(dilation, dilation),
        dimension_numbers=("NCHW", "OIHW", "NCHW"))
    scale = (bn_gamma / jnp.sqrt(bn_var + eps)).reshape(1, -1, 1, 1)
    shift = (bn_beta - bn_mean * bn_gamma / jnp.sqrt(bn_var + eps)).reshape(1, -1, 1, 1)
    return jnp.maximum(y * scale + shift, 0.0)


if __name__ == "__main__":
    # _ASPPModule(inplanes=4, planes=8, kernel_size=3, padding=2, dilation=2, BN)
    N, Cin, H, W = 2, 4, 16, 16
    Cout, K, padding, dilation = 8, 3, 2, 2

    key = jax.random.PRNGKey(0)
    kx, kw = jax.random.split(key)

    x = jax.random.normal(kx, (N, Cin, H, W), dtype=jnp.float32)

    # kaiming_normal_ (fan_in mode, gain=sqrt(2)): std = sqrt(2 / (Cin*K*K))
    fan_in = Cin * K * K
    weight = jax.random.normal(kw, (Cout, Cin, K, K), dtype=jnp.float32) * jnp.sqrt(
        2.0 / fan_in)

    # init_weight(): BN gamma=1, beta=0; fresh running stats (inference mode).
    gamma = jnp.ones((Cout,), jnp.float32)
    beta = jnp.zeros((Cout,), jnp.float32)
    running_mean = jnp.zeros((Cout,), jnp.float32)
    running_var = jnp.ones((Cout,), jnp.float32)

    out = aspp_module_forward(x, weight, gamma, beta, running_mean, running_var,
                              padding=padding, dilation=dilation)
    out = jax.block_until_ready(out)

    ref = _reference(x, weight, gamma, beta, running_mean, running_var,
                     padding=padding, dilation=dilation)
    # bf16 MXU inputs -> compare against the f32 reference at bf16 tolerance.
    np.testing.assert_allclose(np.asarray(out), np.asarray(ref),
                               rtol=5e-2, atol=5e-2)

    print("KERNEL_OK")
</pallas_src>

<mosaic_0001>
module attributes {stable_mosaic.version = 11 : i64} {
  func.func @_aspp_kernel(%arg0: i32, %arg1: memref<1x4x420xbf16, #tpu.memory_space<vmem>>, %arg2: memref<8x36xbf16, #tpu.memory_space<vmem>>, %arg3: memref<8x1xf32, #tpu.memory_space<vmem>>, %arg4: memref<1x8x320xf32, #tpu.memory_space<vmem>>) attributes {dimension_semantics = [#tpu.dimension_semantics<parallel>], iteration_bounds = array<i64: 2>, scalar_prefetch = 0 : i64, scratch_operands = 0 : i64, tpu.core_type = #tpu.core_type<tc>, window_params = [{transform_indices = @transform_0, window_bounds = array<i64: 1, 4, 420>}, {pipeline_mode = #tpu.pipeline_mode<synchronous>, transform_indices = @transform_1, window_bounds = array<i64: 8, 36>}, {pipeline_mode = #tpu.pipeline_mode<synchronous>, transform_indices = @transform_2, window_bounds = array<i64: 8, 1>}, {transform_indices = @transform_3, window_bounds = array<i64: 1, 8, 320>}]} {
    %c0 = arith.constant 0 : index
    %c0_0 = arith.constant 0 : index
    %c0_1 = arith.constant 0 : index
    %0 = vector.load %arg1[%c0, %c0_0, %c0_1] : memref<1x4x420xbf16, #tpu.memory_space<vmem>>, vector<1x4x420xbf16>
    %1 = vector.shape_cast %0 : vector<1x4x420xbf16> to vector<4x420xbf16>
    %2 = vector.extract_strided_slice %1 {offsets = [0, 0], sizes = [4, 320], strides = [1, 1]} : vector<4x420xbf16> to vector<4x320xbf16>
    %3 = vector.extract_strided_slice %1 {offsets = [0, 2], sizes = [4, 320], strides = [1, 1]} : vector<4x420xbf16> to vector<4x320xbf16>
    %4 = vector.extract_strided_slice %1 {offsets = [0, 4], sizes = [4, 320], strides = [1, 1]} : vector<4x420xbf16> to vector<4x320xbf16>
    %5 = vector.extract_strided_slice %1 {offsets = [0, 40], sizes = [4, 320], strides = [1, 1]} : vector<4x420xbf16> to vector<4x320xbf16>
    %6 = vector.extract_strided_slice %1 {offsets = [0, 42], sizes = [4, 320], strides = [1, 1]} : vector<4x420xbf16> to vector<4x320xbf16>
    %7 = vector.extract_strided_slice %1 {offsets = [0, 44], sizes = [4, 320], strides = [1, 1]} : vector<4x420xbf16> to vector<4x320xbf16>
    %8 = vector.extract_strided_slice %1 {offsets = [0, 80], sizes = [4, 320], strides = [1, 1]} : vector<4x420xbf16> to vector<4x320xbf16>
    %9 = vector.extract_strided_slice %1 {offsets = [0, 82], sizes = [4, 320], strides = [1, 1]} : vector<4x420xbf16> to vector<4x320xbf16>
    %10 = vector.extract_strided_slice %1 {offsets = [0, 84], sizes = [4, 320], strides = [1, 1]} : vector<4x420xbf16> to vector<4x320xbf16>
    %11 = tpu.concatenate %2, %3, %4, %5, %6, %7, %8, %9, %10 in 0 : vector<4x320xbf16>, vector<4x320xbf16>, vector<4x320xbf16>, vector<4x320xbf16>, vector<4x320xbf16>, vector<4x320xbf16>, vector<4x320xbf16>, vector<4x320xbf16>, vector<4x320xbf16> -> vector<36x320xbf16>
    %c0_2 = arith.constant 0 : index
    %c0_3 = arith.constant 0 : index
    %12 = vector.load %arg2[%c0_2, %c0_3] : memref<8x36xbf16, #tpu.memory_space<vmem>>, vector<8x36xbf16>
    %cst = arith.constant dense<0.000000e+00> : vector<8x320xf32>
    %13 = tpu.matmul %12, %11, %cst {dimension_numbers = #tpu.dot_dimension_numbers<[1], [0], [0], [1], [0, 0, 1, 1], [], []>} : vector<8x36xbf16>, vector<36x320xbf16>, vector<8x320xf32> -> vector<8x320xf32>
    %c0_4 = arith.constant 0 : index
    %c0_5 = arith.constant 0 : index
    %14 = vector.load %arg3[%c0_4, %c0_5] : memref<8x1xf32, #tpu.memory_space<vmem>>, vector<8x1xf32>
    %15 = vector.broadcast %14 : vector<8x1xf32> to vector<8x320xf32>
    %16 = arith.addf %13, %15 : vector<8x320xf32>
    %cst_6 = arith.constant 0.000000e+00 : f32
    %17 = vector.broadcast %cst_6 : f32 to vector<8x320xf32>
    %18 = arith.maximumf %16, %17 : vector<8x320xf32>
    %c0_7 = arith.constant 0 : index
    %c0_8 = arith.constant 0 : index
    %c0_9 = arith.constant 0 : index
    %19 = vector.load %arg4[%c0_7, %c0_8, %c0_9] : memref<1x8x320xf32, #tpu.memory_space<vmem>>, vector<1x8x320xf32>
    %20 = vector.shape_cast %19 : vector<1x8x320xf32> to vector<8x320xf32>
    %21 = vector.shape_cast %18 : vector<8x320xf32> to vector<1x8x320xf32>
    tpu.vector_store %arg4[%c0_7, %c0_8, %c0_9], %21 {strides = array<i32>} : memref<1x8x320xf32, #tpu.memory_space<vmem>>, vector<1x8x320xf32>,
    return
  }
  func.func @transform_0(%arg0: i32) -> (i32, i32, i32) {
    %c0_i32 = arith.constant 0 : i32
    %c0_i32_0 = arith.constant 0 : i32
    %c0_i32_1 = arith.constant 0 : i32
    return %arg0, %c0_i32, %c0_i32_0 : i32, i32, i32
  }
  func.func @transform_1(%arg0: i32) -> (i32, i32) {
    %c0_i32 = arith.constant 0 : i32
    %c0_i32_0 = arith.constant 0 : i32
    %c0_i32_1 = arith.constant 0 : i32
    return %c0_i32, %c0_i32_0 : i32, i32
  }
  func.func @transform_2(%arg0: i32) -> (i32, i32) {
    %c0_i32 = arith.constant 0 : i32
    %c0_i32_0 = arith.constant 0 : i32
    %c0_i32_1 = arith.constant 0 : i32
    return %c0_i32, %c0_i32_0 : i32, i32
  }
  func.func @transform_3(%arg0: i32) -> (i32, i32, i32) {
    %c0_i32 = arith.constant 0 : i32
    %c0_i32_0 = arith.constant 0 : i32
    %c0_i32_1 = arith.constant 0 : i32
    return %arg0, %c0_i32, %c0_i32_0 : i32, i32, i32
  }
}

</mosaic_0001>

<bundles_post_ra>
// kernel: tpu_custom_call.1
= control target key start
LH: loop header
LB: loop body
LE: loop exit
PB: predicated region body
PF: predicated region fallthrough
CT: control target
= control target key end

     0   :  { %8 = vsyncpa [#allocation3], 0  ;;  %s985_s0 = inlined_call_operand.hbm [shape: bf16[2,4,420], index: 0, kind: input, shape index: {}]   ;;  %s986_s1 = inlined_call_operand.vmem [shape: bf16[8,36], index: 1, kind: input, shape index: {}]   ;;  %s987_s2 = inlined_call_operand.vmem [shape: f32[8,1], index: 2, kind: input, shape index: {}]   ;;  %s988_s3 = inlined_call_operand.hbm [shape: f32[2,8,320], index: 3, kind: output, shape index: {}]  }
   0x1   :  { %10 = vsyncpa [#allocation3 + $0x1], 0 }
   0x2   :  { %11 = vsyncpa [#allocation4], 0 }
   0x3   :  { %13 = vsyncpa [#allocation4 + $0x1], 0  ;;  %s765_s12 = smov 0   ;;  %s767_s13 = smov 0  }
   0x4   :  { %s769_s14 = smov 0   ;;  %s771_s15 = smov 0  }
   0x5 LB: > { %s786_s16 = sadd.s32 4294967295, %s729_s15   ;;  %s544_s17 = sadd.s32 4294967294, %s729_s15   ;;  %s729_s15 = sphi %s771_s15, %s1005_s15   ;;  %s725_s14 = sphi %s769_s14, %s1004_s14   ;;  %s721_s13 = sphi %s767_s13, %s1003_s13   ;;  %s717_s12 = sphi %s765_s12, %s1002_s12  }
   0x6   : > { %s790_s18 = sadd.s32 1, %s729_s15   ;;  %s26_s19 = sadd.s32 1, %s725_s14 }
   0x7   : > { %s23_s20 = ssub.s32 %s729_s15, %s790_s18  ;;  %p33_p0 = scmp.ne.s32.totalorder %s725_s14, %s721_s13 }
   0x8   : > { %p24_p1 = scmp.eq.s32.totalorder %s23_s20, 0  ;;  %p34_p2 = scmp.eq.s32.totalorder %s729_s15, 0 }
   0x9   : > { %p39_p3 = scmp.ne.s32.totalorder %s721_s13, %s717_s12  ;;  %p40_p4 = scmp.eq.s32.totalorder %s786_s16, 0 }
   0xa   : > { %s802_s21 = scalar_select %p24_p1, %s725_s14, %s26_s19  }
   0xb   : > { %p804_p5 = por %p34_p2, %p33_p0  ;;  %p808_p6 = por %p40_p4, %p39_p3 }
   0xc   : > { %p105_p7 = scmp.eq.s32.totalorder %s786_s16, 1  ;;  %p111_p8 = scmp.eq.s32.totalorder %s544_s17, 1 }
   0xd   : > { %s992_s23 = scalar_select %p808_p6, 1, 0 }
   0xe   : > { %p587_p10 = scmp.lt.s32.totalorder %s729_s15, 2  ;;  %p815_p11 = por %p105_p7, %p33_p0 }
   0xf   : > { %p819_p12 = por %p111_p8, %p39_p3  ;;  %s137_s26 = sand.u32 1, %s725_s14  }
  0x10   : > { %s993_s24 = scalar_select %p815_p11, 1, 0 }
  0x11   : > { %s994_s25 = scalar_select %p819_p12, 1, 0 }
  0x12   : > { %s558_s27 = sshll.u32 %s729_s15, 7  ;;  %s547_s28 = sshll.u32 %s137_s26, 3 }
  0x13   : > { %s828_s4 = scalar_lea.hbm %s985_s0, %s558_s27  ;;  %s141_s5 = scalar_lea.vmem [#allocation2], %s547_s28 }
  0x14   : > { %s149_s6 = sshll.u32 %s141_s5, 4  ;;  %p832_p13 = pnand %p587_p10, %p804_p5  ;;  %s836_s6 = int_to_ptr.vmem [resolvable:$true] %s149_s6 }
  0x15   : > { %s138_s8 = scalar_lea.sflag [#allocation3], %s137_s26  ;;  %s637_s9 = scalar_lea.hbm %s828_s4, 128 }
  0x16   : > { %p638_p2 = scmp.ne.s32.totalorder %s828_s4, %s637_s9  ;;  %p639_p3 = pneg %p832_p13 }
  0x17   : > { %s642_s17 = scalar_lea.hbm %s985_s0, 256  ;;  %p643_p5 = scmp.lt.s32.totalorder %s828_s4, %s985_s0 }
  0x18   : > { %p640_p4 = pnand %p639_p3, %p638_p2  ;;  %p644_p8 = scmp.lt.s32.totalorder %s642_s17, %s637_s9 }
  0x1a   : > { %p641_p7 = pneg %p640_p4  ;;  %p645_p10 = por %p644_p8, %p643_p5 }
  0x1c   : > { %p646_p9 = pnand %p645_p10, %p641_p7 }
  0x1e   : > { %649 = shalt.err (!%p646_p9)
}
  0x1f   : > { %s650_s22 = scalar_lea.vmem %s836_s6, 128  ;;  %s731_s26 = smov [#allocation2]  }
  0x20   : > { %p651_p0 = scmp.ne.s32.totalorder %s836_s6, %s650_s22  ;;  %s655_s27 = sshll.u32 %s731_s26, 4  ;;  %s656_s27 = int_to_ptr.vmem [resolvable:$false] %s655_s27 }
  0x21   : > { %s657_s28 = scalar_lea.vmem %s656_s27, 256  ;;  %p658_p4 = scmp.lt.s32.totalorder %s836_s6, %s656_s27 }
  0x22   : > { %p653_p1 = pnand %p651_p0, %p639_p3  ;;  %p659_p12 = scmp.lt.s32.totalorder %s657_s28, %s650_s22 }
  0x24   : > { %p654_p2 = pneg %p653_p1  ;;  %p660_p11 = por %p659_p12, %p658_p4 }
  0x26   : > { %p661_p6 = pnand %p660_p11, %p654_p2 }
  0x28   : > { %664 = shalt.err (!%p661_p6)
}
  0x29   : > { %582 = dma.hbm_to_vmem [thread:$0]  (!%p832_p13), %s828_s4, 128, %s836_s6, %s138_s8  }
  0x2a   : > { %p996_p9 = scmp.lt.s32.totalorder %s729_s15, 3  ;;  %p997_p7 = scmp.ge.s32.totalorder %s729_s15, 1 }
  0x2c   : > { %p155_p0 = pnand %p997_p7, %p996_p9 }
  0x2d   : > { %s863_s29 = sand.u32 (!%p155_p0), 1, %s721_s13   ;;  %p998_p6 = scmp.ne.s32.totalorder (!%p155_p0), %s992_s23, 0 }
  0x2e   : > { %158 = sbr.rel (%p155_p0) target bundleno = 445 (0x1bd), region = 32  ;;  %s551_s30 = sshll.u32 (!%p155_p0), %s863_s29, 3 }
  0x2f   : > { %s161_s5 = scalar_lea.sflag (!%p155_p0), [#allocation3], %s863_s29  ;;  %s164_s9 = scalar_lea.vmem (!%p155_p0), [#allocation2], %s551_s30 }
  0x33   : > { %708 = dma.done.wait (%p998_p6), %s161_s5, 128  }
  0x34   : > { %710 = vsyncadd (%p998_p6), %s161_s5, 4294967168  ;;  %v194_v0 = vlaneseq  ;;  %v732_v1 = vmov 1983009808   ;;  %v188_v6 = vld [vmem:[%s164_s9] sm:$0xff]  ;;  %s733_s4 = smov 86   ;;  %s734_s6 = smov 44  }
  0x35   : > { %v192_v2 = vunpack.c.l.s4 %v732_v1  ;;  %v190_v8 = vcombine.high %v188_v6, %v188_v6  ;;  %v206_v10 = vcombine.low %v188_v6, %v188_v6  ;;  %s735_s23 = smov 84   ;;  %v736_v14 = vmov 0.0   ;;  %s737_s7 = smov 48   ;;  %v352_v20 = vld [vmem:[%s987_s2] sm:$0xff] }
  0x36   : > { %v195_v3 = vshrl.u32 %v194_v0, 7  ;;  %563 = vmatprep.subr.bf16.mxu1 %v736_v14  ;;  %s738_s8 = smov 46   ;;  %s739_s10 = smov 126   ;;  %vm740_vm0 = vmmov 0   ;;  %v742_v19 = vmov 0   ;;  %vm296_vm1 = vcmask 359424  }
  0x37   : > { %v193_v4 = vunpack.c.0.s8 %v192_v2  ;;  %569 = vmatprep.mubr.msk.bf16.mxu1 %vm740_vm0, %v736_v14  ;;  %s741_s11 = smov 124   ;;  %403 = vmatprep.mubr.bf16.mxu0 %v742_v19  ;;  %s743_s17 = smov 88   ;;  %vm300_vm2 = vcmask 1041408   ;;  %vm260_vm3 = vcmask 687104   ;;  %vm271_vm4 = vcmask 392192  }
  0x38   : > { %633 = vset.pattern.permute.xlu1 %v742_v19  ;;  %634 = vset.pattern.permute.xlu0 %v742_v19  ;;  %vm251_vm5 = vcmask 703488   ;;  %vm283_vm6 = vcmask 375808   ;;  %vm310_vm7 = vcmask 1043456   ;;  %vm317_vm8 = vcmask 1045504   ;;  %s573_s27 = smul.u32 24, %s863_s29  ;;  %p999_p12 = scmp.ne.s32.totalorder %s993_s24, 0 }
  0x39   : > { %v196_v5 = vsub.s32 %v193_v4, %v195_v3  ;;  %vm221_vm9 = vcmask 1031168   ;;  %vm232_vm10 = vcmask 1014784   ;;  %vm242_vm11 = vcmask 719872   ;;  %s574_s30 = smul.u32 384, %s786_s16  ;;  %s744_s16 = smov [#allocation5]  }
  0x3a   : > { %vm358_vm12 = vcmask 293888   ;;  %vm457_vm13 = vcmask 523264   ;;  %s186_s28 = scalar_lea.vmem [#allocation5], %s573_s27 }
  0x3b   : > { %v871_v7 = vrot.slane %v188_v6, %v196_v5  ;;  %v875_v9 = vrot.slane %v190_v8, %v196_v5  ;;  %v213_v12 = vrot.slane %v206_v10, %v196_v5  ;;  %s474_s5 = sshll.u32 %s186_s28, 4  ;;  %s475_s5 = int_to_ptr.vmem [resolvable:$true] %s474_s5 }
  0x3d   : > { %245 = vrot.lane.b32.xlu1 %v871_v7, %s733_s4  ;;  %288 = vrot.lane.b32.xlu0 %v871_v7, %s734_s6  ;;  %v881_v11 = vcombine.high %v871_v7, %v871_v7  ;;  %v214_v13 = vcombine.high %v213_v12, %v213_v12  ;;  %v287_v15 = vcombine.high %v875_v9, %v875_v9 }
  0x3e   : > { %v225_v16 = vcombine.low %v875_v9, %v875_v9  ;;  %v224_v17 = vcombine.low %v871_v7, %v871_v7  ;;  %v235_v18 = vcombine.low %v213_v12, %v213_v12 }
  0x41   : > { %258 = vrot.lane.b32.xlu0 %v871_v7, %s735_s23  ;;  %292 = vrot.lane.b32.xlu1 %v875_v9, %s734_s6 }
  0x45   : > { %290 = vrot.lane.b32.xlu0 %v881_v11, %s734_s6  ;;  %247 = vrot.lane.b32.xlu1 %v881_v11, %s733_s4 }
  0x49   : > { %249 = vrot.lane.b32.xlu0 %v875_v9, %s733_s4  ;;  %256 = vrot.lane.b32.xlu1 %v214_v13, %s735_s23 }
  0x4d   : > { %254 = vrot.lane.b32.xlu0 %v213_v12, %s735_s23  ;;  %265 = vrot.lane.b32.xlu1 %v871_v7, %s737_s7  ;;  %s460_s23 = scalar_lea.sflag [#allocation4], %s863_s29 }
  0x51   : > { %294 = vrot.lane.b32.xlu1 %v287_v15, %s734_s6  ;;  %267 = vrot.lane.b32.xlu0 %v225_v16, %s737_s7  ;;  %s948_s6 = scalar_lea.hbm %s988_s3, %s574_s30 }
  0x55   : > { %277 = vrot.lane.b32.xlu1 %v213_v12, %s738_s8  ;;  %263 = vrot.lane.b32.xlu0 %v224_v17, %s737_s7 }
  0x59   : > { %275 = vrot.lane.b32.xlu1 %v235_v18, %s738_s8  ;;  %279 = vrot.lane.b32.xlu0 %v224_v17, %s738_s8 }
  0x5d   : > { %219 = vrot.lane.b32.xlu1 %v871_v7, %s739_s10  ;;  %217 = vrot.lane.b32.xlu0 %v214_v13, %s739_s10 }
  0x61   : > { %215 = vrot.lane.b32.xlu1 %v213_v12, %s739_s10  ;;  %269 = vrot.lane.b32.xlu0 %v875_v9, %s737_s7  ;;  %s665_s7 = scalar_lea.vmem %s475_s5, 384 }
  0x62   : > { %p666_p11 = scmp.ne.s32.totalorder %s475_s5, %s665_s7 }
  0x64   : > { %p667_p13 = pnand %p666_p11, %p999_p12 }
  0x65   : > { %230 = vrot.lane.b32.xlu1 %v225_v16, %s741_s11  ;;  %228 = vrot.lane.b32.xlu0 %v871_v7, %s741_s11 }
  0x66   : > { %p668_p1 = pneg %p667_p13 }
  0x69   : > { %226 = vrot.lane.b32.xlu1 %v224_v17, %s741_s11  ;;  %281 = vrot.lane.b32.xlu0 %v871_v7, %s738_s8  ;;  %s669_s8 = sshll.u32 %s744_s16, 4  ;;  %s670_s8 = int_to_ptr.vmem [resolvable:$false] %s669_s8 }
  0x6a   : > { %s671_s10 = scalar_lea.vmem %s670_s8, 768  ;;  %p672_p3 = scmp.lt.s32.totalorder %s475_s5, %s670_s8 }
  0x6b   : > { %p673_p5 = scmp.lt.s32.totalorder %s671_s10, %s665_s7 }
  0x6d   : > { %240 = vrot.lane.b32.xlu1 %v224_v17, %s743_s17  ;;  %238 = vrot.lane.b32.xlu0 %v213_v12, %s743_s17  ;;  %p674_p8 = por %p673_p5, %p672_p3 }
  0x6f   : > { %p675_p10 = pnand %p674_p8, %p668_p1 }
  0x71   : > { %236 = vrot.lane.b32.xlu0 %v235_v18, %s743_s17  ;;  %355 = vperm.xlu1 %633, %v352_v20  }
  0xaf   : > { %v246_v21 = vpop.permute.xlu1 %245  ;;  %v289_v22 = vpop.permute.xlu0 %288 }
  0xb3   : > { %v259_v23 = vpop.permute.xlu0 %258  ;;  %v293_v24 = vpop.permute.xlu1 %292 }
  0xb7   : > { %v291_v25 = vpop.permute.xlu0 %290  ;;  %v248_v26 = vpop.permute.xlu1 %247 }
  0xb8   : > { %v298_v27 = vsel %vm296_vm1, %v291_v25, %v293_v24  ;;  %v297_v28 = vsel %vm296_vm1, %v289_v22, %v291_v25  ;;  %v252_v45 = vsel %vm251_vm5, %v246_v21, %v248_v26 }
  0xb9   : > { %552 = vmatprep.subr.msk.bf16.mxu0 %vm300_vm2, %v298_v27  ;;  %v363_v29 = vsel %vm300_vm2, %v297_v28, 0 }
  0xba   : > { %382 = vmatpush1.bf16.msra.mxu0 %v363_v29 }
  0xbb   : > { %v250_v30 = vpop.permute.xlu0 %249  ;;  %v257_v31 = vpop.permute.xlu1 %256 }
  0xbc   : > { %v253_v40 = vsel %vm251_vm5, %v248_v26, %v250_v30  ;;  %v262_v41 = vsel %vm260_vm3, %v257_v31, %v259_v23  ;;  %v335_v63 = vsel %vm300_vm2, %v250_v30, %v259_v23 }
  0xbd   : > { %v332_v46 = vsel %vm300_vm2, %v253_v40, %v262_v41 }
  0xbf   : > { %v255_v32 = vpop.permute.xlu0 %254  ;;  %v266_v33 = vpop.permute.xlu1 %265 }
  0xc0   : > { %v261_v42 = vsel %vm260_vm3, %v255_v32, %v257_v31 }
  0xc1   : > { %v329_v47 = vsel %vm300_vm2, %v252_v45, %v261_v42 }
  0xc3   : > { %v295_v34 = vpop.permute.xlu1 %294  ;;  %v268_v35 = vpop.permute.xlu0 %267 }
  0xc4   : > { %v299_v36 = vsel %vm296_vm1, %v293_v24, %v295_v34  ;;  %v273_v43 = vsel %vm271_vm4, %v266_v33, %v268_v35 }
  0xc5   : > { %v369_v37 = vsel %vm300_vm2, %v299_v36, 0  ;;  %v339_v52 = vsel %vm310_vm7, %v332_v46, %v273_v43 }
  0xc6   : > { %564 = vmatpush3.bf16.msra.mxu1 %v369_v37 }
  0xc7   : > { %v278_v38 = vpop.permute.xlu1 %277  ;;  %v264_v39 = vpop.permute.xlu0 %263  ;;  %565 = vmatprep.subr.bf16.mxu1 %v736_v14 }
  0xc8   : > { %v272_v44 = vsel %vm271_vm4, %v264_v39, %v266_v33 }
  0xc9   : > { %v337_v53 = vsel %vm310_vm7, %v329_v47, %v272_v44 }
  0xcb   : > { %v276_v48 = vpop.permute.xlu1 %275  ;;  %v280_v49 = vpop.permute.xlu0 %279 }
  0xcc   : > { %v284_v50 = vsel %vm283_vm6, %v276_v48, %v278_v38  ;;  %v285_v51 = vsel %vm283_vm6, %v278_v38, %v280_v49 }
  0xcd   : > { %v346_v54 = vsel %vm317_vm8, %v339_v52, %v285_v51  ;;  %v343_v55 = vsel %vm317_vm8, %v337_v53, %v284_v50 }
  0xce   : > { %383 = vmatprep.subr.bf16.mxu0 %v346_v54 }
  0xcf   : > { %v220_v56 = vpop.permute.xlu1 %219  ;;  %384 = vmatpush1.bf16.msra.mxu0 %v343_v55  ;;  %v218_v57 = vpop.permute.xlu0 %217 }
  0xd0   : > { %v223_v2 = vsel %vm221_vm9, %v218_v57, %v220_v56  ;;  %v309_v8 = vsel %vm300_vm2, %v875_v9, %v220_v56 }
  0xd1   : > { %v306_v10 = vsel %vm300_vm2, %v881_v11, %v223_v2  ;;  %v351_v11 = vld [vmem:[%s986_s1] sm:$0xf] }
  0xd3   : > { %v216_v58 = vpop.permute.xlu1 %215  ;;  %v270_v59 = vpop.permute.xlu0 %269 }
  0xd4   : > { %v274_v62 = vsel %vm271_vm4, %v268_v35, %v270_v59  ;;  %v222_v16 = vsel %vm221_vm9, %v216_v58, %v218_v57 }
  0xd5   : > { %v341_v4 = vsel %vm310_vm7, %v335_v63, %v274_v62 }
  0xd7   : > { %v231_v60 = vpop.permute.xlu1 %230  ;;  %v229_v61 = vpop.permute.xlu0 %228 }
  0xd8   : > { %v234_v5 = vsel %vm232_vm10, %v229_v61, %v231_v60  ;;  %v316_v12 = vsel %vm310_vm7, %v309_v8, %v231_v60 }
  0xd9   : > { %v314_v18 = vsel %vm310_vm7, %v306_v10, %v234_v5 }
  0xdb   : > { %v227_v0 = vpop.permute.xlu1 %226  ;;  %v282_v1 = vpop.permute.xlu0 %281 }
  0xdc   : > { %v286_v3 = vsel %vm283_vm6, %v280_v49, %v282_v1  ;;  %v233_v9 = vsel %vm232_vm10, %v227_v0, %v229_v61 }
  0xdd   : > { %v349_v6 = vsel %vm317_vm8, %v341_v4, %v286_v3 }
  0xde   : > { %566 = vmatpush3.bf16.msra.mxu1 %v349_v6 }
  0xdf   : > { %v241_v13 = vpop.permute.xlu1 %240  ;;  %v239_v15 = vpop.permute.xlu0 %238  ;;  %567 = vmatprep.subr.bf16.mxu1 %v736_v14  ;;  %v303_v14 = vsel %vm300_vm2, %v871_v7, %v222_v16 }
  0xe0   : > { %v244_v17 = vsel %vm242_vm11, %v239_v15, %v241_v13  ;;  %v325_v19 = vsel %vm317_vm8, %v316_v12, %v241_v13  ;;  %v312_v23 = vsel %vm310_vm7, %v303_v14, %v233_v9 }
  0xe1   : > { %v322_v20 = vsel %vm317_vm8, %v314_v18, %v244_v17 }
  0xe2   : > { %385 = vmatprep.subr.bf16.mxu0 %v322_v20  ;;  %568 = vmatpush3.bf16.msra.mxu1 %v325_v19 }
  0xe3   : > { %v237_v21 = vpop.permute.xlu0 %236 }
  0xe4   : > { %v243_v22 = vsel %vm242_vm11, %v237_v21, %v239_v15 }
  0xe5   : > { %570 = vmatmul.mubr.msk.bf16.vlgmr.msra.gmra.mxu1 %vm358_vm12, %v351_v11  ;;  %v319_v24 = vsel %vm317_vm8, %v312_v23, %v243_v22 }
  0xe6   : > { %386 = vmatpush1.bf16.msra.mxu0 %v319_v24 }
  0xe9   : > { %553 = vmatmul.mubr.msk.bf16.vlgmr.msra.gmra.mxu0 %vm358_vm12, %v351_v11 }
  0xec   : > { %v356_v26 = vpop.permute.xlu1 %355 }
 0x1a5   : > { %v446_v25 = vpop.f32.mrf.mxu1 }
 0x1a6   : > { %v447_v27 = vadd.f32 %v446_v25, %v356_v26 }
 0x1a7   : > { %v571_v28 = vpop.f32.mrf.mxu1 }
 0x1a8   : > { %v454_v29 = vmax.f32 %v447_v27, 0.0 }
 0x1a9   : > { %v405_v30 = vpop.f32.mrf.mxu0  ;;  %v449_v7 = vpop.f32.mrf.mxu1 }
 0x1aa   : > { %v406_v31 = vadd.f32 %v405_v30, %v356_v26  ;;  %458 = vst.msk [vmem:[%s186_s28 + $0x10] sm:$0xff] %vm457_vm13, %v454_v29 }
 0x1ab   : > { %v407_v32 = vpop.f32.mrf.mxu0  ;;  %v572_v33 = vpop.f32.mrf.mxu1 }
 0x1ac   : > { %v452_v34 = vmax.f32 %v406_v31, 0.0  ;;  %v408_v35 = vadd.f32 %v407_v32, %v356_v26 }
 0x1ad   : > { %v409_v36 = vpop.f32.mrf.mxu0 }
 0x1ae   : > { %455 = vst [vmem:[%s186_s28] sm:$0xff] %v452_v34  ;;  %v453_v37 = vmax.f32 %v408_v35, 0.0 }
 0x1af   : > { %v410_v38 = vpop.f32.mrf.mxu0 }
 0x1b0   : > { %456 = vst [vmem:[%s186_s28 + $0x8] sm:$0xff] %v453_v37 }
 0x1b1   : > { %678 = shalt.err (!%p675_p10)
}
 0x1b2   : > { %s679_s11 = scalar_lea.hbm %s948_s6, 384  ;;  %s683_s19 = scalar_lea.hbm %s988_s3, 768 }
 0x1b3   : > { %p680_p2 = scmp.ne.s32.totalorder %s948_s6, %s679_s11  ;;  %p684_p7 = scmp.lt.s32.totalorder %s948_s6, %s988_s3 }
 0x1b4   : > { %p685_p0 = scmp.lt.s32.totalorder %s683_s19, %s679_s11 }
 0x1b5   : > { %p681_p4 = pnand %p680_p2, %p999_p12 }
 0x1b6   : > { %p686_p6 = por %p685_p0, %p684_p7 }
 0x1b7   : > { %p682_p9 = pneg %p681_p4 }
 0x1b9   : > { %p687_p11 = pnand %p686_p6, %p682_p9 }
 0x1bb   : > { %690 = shalt.err (!%p687_p11)
}
 0x1bc   : > { %577 = dma.vmem_to_hbm [thread:$0]  (%p999_p12), %s475_s5, 384, %s948_s6, %s460_s23  }
 0x1bd PF: > { %s486_s26 = sand.u32 1, %s717_s12   ;;  %p1000_p13 = scmp.ne.s32.totalorder %s994_s25, 0 }
 0x1be   : > { %p1001_p1 = scmp.ge.s32.totalorder %s729_s15, 2  ;;  %s487_s27 = scalar_lea.sflag [#allocation4], %s486_s26 }
 0x1c0   : > { %p584_p3 = pnand %p1001_p1, %p1000_p13 }
 0x1c2   : > { %p585_p5 = pneg %p584_p3 }
 0x1c4   : > { %712 = dma.done.wait (%p585_p5), %s487_s27, 384  }
 0x1c5   : > { %714 = vsyncadd (%p585_p5), %s487_s27, 4294966912  ;;  %p16_p8 = scmp.ge.s32.totalorder %s790_s18, 4   ;;  %s1002_s12 = smov %s721_s13 }
 0x1c6   : > { %s1003_s13 = smov %s725_s14  ;;  %s1004_s14 = smov %s802_s21 }
 0x1c7   : > { %s1005_s15 = smov %s790_s18  ;;  %18 = sbr.rel (!%p16_p8) target bundleno = 5 (0x5), region = 77 }
 0x1cc   :  { %492 = vsyncpa [#allocation3], 1 }
 0x1cd   :  { %494 = vsyncpa [#allocation3 + $0x1], 1 }
 0x1ce   :  { %495 = vsyncpa [#allocation4], 1 }
 0x1cf   :  { %497 = vsyncpa [#allocation4 + $0x1], 1 }

</bundles_post_ra>
